<compile_context>
chip_gen: v5e
topology: v5e:2x2
jax: 0.10.0
libtpu: 0.0.40
codegen_flags: <defaults>
</compile_context>

<pallas_src>
import numpy as np
import jax
import jax.numpy as jnp
from jax.experimental import pallas as pl
from jax.experimental.pallas import tpu as pltpu


def _bicubic_kernels(scale_factor: int, a: float = -0.75) -> np.ndarray:
    """Reproduce the (s, 4) kernel bank from BicubicUpsample.__init__."""
    cubic = np.array(
        [[0.0, a, -2.0 * a, a],
         [1.0, 0.0, -(a + 3.0), a + 2.0],
         [0.0, -a, 2.0 * a + 3.0, -(a + 2.0)],
         [0.0, 0.0, a, -a]],
        dtype=np.float32,
    )
    rows = []
    for d in range(scale_factor):
        t = 1.0 * d / scale_factor
        vec = np.array([1.0, t, t ** 2, t ** 3], dtype=np.float32)
        rows.append(cubic @ vec)
    return np.stack(rows).astype(np.float32)  # (s, 4)


def _interp_matrix_folded(size: int, s: int, kernels: np.ndarray) -> np.ndarray:
    """Banded matrix M (size*s, size) with replicate padding folded in.

    M[i*s+d, clamp(i+p-1, 0, size-1)] += kernels[d, p]
    so that  M @ x  ==  (unfolded band matrix) @ replicate_pad(x, (1, 2)).
    """
    m = np.zeros((size * s, size), dtype=np.float32)
    for i in range(size):
        for d in range(s):
            for p in range(4):
                src = min(max(i + p - 1, 0), size - 1)
                m[i * s + d, src] += kernels[d, p]
    return m


def _upsample_kernel(a_ref, bt_ref, x_ref, o_ref):
    bb, h, w = x_ref.shape            # bb batched N*C slices per grid step
    a = a_ref[...]                    # (h*s, h)   vertical interp matrix
    bt = bt_ref[...]                  # (w, w*s)   horizontal interp matrix (transposed)
    x = x_ref[...]                    # (bb, h, w)

    # Horizontal pass: one big lane-dense MXU matmul with f32 accumulation,
    #   (bb*h, w) @ (w, w*s) -> (bb*h, w*s).
    tmp = jnp.dot(x.reshape(bb * h, w), bt, preferred_element_type=jnp.float32)
    tmp = tmp.reshape(bb, h, bt.shape[1]).astype(a.dtype)

    # Vertical pass per slice: (h*s, h) @ (h, w*s) -> (h*s, w*s).
    # bb is a small static Python int, so this unrolls; no transposes needed.
    for b in range(bb):
        o_ref[b] = jnp.dot(a, tmp[b],
                           preferred_element_type=jnp.float32).astype(o_ref.dtype)


def _pick_block_batch(nc: int, h: int, w: int, s: int, max_bb: int = 8) -> int:
    """Largest power-of-two batch of NC slices per grid step that (a) divides
    NC, (b) keeps the f32 output block <= ~8 MiB, and preferably (c) leaves an
    even grid extent so v7x can shard the parallel axis across both cores."""
    def fits(bb):
        return bb * h * s * w * s * 4 <= (8 << 20)

    for bb in (max_bb, 4, 2, 1):
        if nc % bb == 0 and fits(bb) and (nc // bb) % 2 == 0:
            return bb
    for bb in (max_bb, 4, 2, 1):
        if nc % bb == 0 and fits(bb):
            return bb
    return 1


def _vmem_budget_bytes(bb: int, h: int, w: int, s: int, compute_dtype) -> int:
    isz = jnp.dtype(compute_dtype).itemsize
    a_b = h * s * h * isz
    bt_b = w * w * s * isz
    x_b = bb * h * w * isz
    o_b = bb * h * s * w * s * 4          # output stays f32
    tmp_b = bb * h * w * s * 4            # f32 intermediate in vregs/VMEM
    need = 2 * (x_b + o_b + a_b + bt_b) + tmp_b   # double-buffered blocks
    # Generous headroom, but stay well inside v7x's 64 MiB physical VMEM.
    return int(min(max(2 * need + (4 << 20), 8 << 20), 48 << 20))


def bicubic_upsample(x: jax.Array, scale_factor: int = 4, a: float = -0.75,
                     compute_dtype=jnp.float32) -> jax.Array:
    n, c, h, w = x.shape
    s = scale_factor
    kernels = _bicubic_kernels(s, a)

    # Padding folded in -> contraction dims are H and W, no jnp.pad.
    A = jnp.asarray(_interp_matrix_folded(h, s, kernels),
                    dtype=compute_dtype)                       # (h*s, h)
    Bt = jnp.asarray(np.ascontiguousarray(_interp_matrix_folded(w, s, kernels).T),
                     dtype=compute_dtype)                      # (w, w*s)

    nc = n * c
    bb = _pick_block_batch(nc, h, w, s)
    xf = x.reshape(nc, h, w).astype(compute_dtype)

    out = pl.pallas_call(
        _upsample_kernel,
        out_shape=jax.ShapeDtypeStruct((nc, h * s, w * s), jnp.float32),
        grid_spec=pltpu.PrefetchScalarGridSpec(
            num_scalar_prefetch=0,
            grid=(nc // bb,),
            in_specs=[
                pl.BlockSpec((h * s, h), lambda g: (0, 0)),        # A (grid-invariant)
                pl.BlockSpec((w, w * s), lambda g: (0, 0)),        # B^T (grid-invariant)
                pl.BlockSpec((bb, h, w), lambda g: (g, 0, 0)),     # bb input slices
            ],
            out_specs=pl.BlockSpec((bb, h * s, w * s), lambda g: (g, 0, 0)),
        ),
        compiler_params=pltpu.CompilerParams(
            dimension_semantics=("parallel",),
            vmem_limit_bytes=_vmem_budget_bytes(bb, h, w, s, compute_dtype),
        ),
    )(A, Bt, xf)
    return out.reshape(n, c, h * s, w * s)


def _reference_upsample(x_np: np.ndarray, s: int, a: float = -0.75) -> np.ndarray:
    """Direct (slow) NumPy reference matching the PyTorch forward semantics."""
    k = _bicubic_kernels(s, a)
    n, c, h, w = x_np.shape
    xp = np.pad(x_np, ((0, 0), (0, 0), (1, 2), (1, 2)), mode="edge")
    out = np.zeros((n, c, h * s, w * s), dtype=np.float32)
    for i in range(h):
        for di in range(s):
            for j in range(w):
                for dj in range(s):
                    patch = xp[:, :, i:i + 4, j:j + 4]
                    out[:, :, i * s + di, j * s + dj] = np.einsum(
                        "ncpq,p,q->nc", patch, k[di], k[dj]
                    )
    return out


if __name__ == "__main__":
    key = jax.random.PRNGKey(0)
    n, c, h, w = 2, 4, 16, 16
    scale = 4
    x = jax.random.normal(key, (n, c, h, w), dtype=jnp.float32)

    y = bicubic_upsample(x, scale_factor=scale)  # default f32 path
    y = jax.block_until_ready(y)

    assert y.shape == (n, c, h * scale, w * scale), y.shape

    ref = _reference_upsample(np.asarray(x), scale)
    np.testing.assert_allclose(np.asarray(y), ref, rtol=1e-4, atol=1e-4)

    print("KERNEL_OK")
</pallas_src>

<mosaic_0001>
module attributes {stable_mosaic.version = 11 : i64} {
  func.func @_upsample_kernel(%arg0: i32, %arg1: memref<64x16xf32, #tpu.memory_space<vmem>>, %arg2: memref<16x64xf32, #tpu.memory_space<vmem>>, %arg3: memref<4x16x16xf32, #tpu.memory_space<vmem>>, %arg4: memref<4x64x64xf32, #tpu.memory_space<vmem>>) attributes {dimension_semantics = [#tpu.dimension_semantics<parallel>], iteration_bounds = array<i64: 2>, scalar_prefetch = 0 : i64, scratch_operands = 0 : i64, tpu.core_type = #tpu.core_type<tc>, window_params = [{pipeline_mode = #tpu.pipeline_mode<synchronous>, transform_indices = @transform_0, window_bounds = array<i64: 64, 16>}, {pipeline_mode = #tpu.pipeline_mode<synchronous>, transform_indices = @transform_1, window_bounds = array<i64: 16, 64>}, {transform_indices = @transform_2, window_bounds = array<i64: 4, 16, 16>}, {transform_indices = @transform_3, window_bounds = array<i64: 4, 64, 64>}]} {
    %c0 = arith.constant 0 : index
    %c0_0 = arith.constant 0 : index
    %0 = vector.load %arg1[%c0, %c0_0] : memref<64x16xf32, #tpu.memory_space<vmem>>, vector<64x16xf32>
    %c0_1 = arith.constant 0 : index
    %c0_2 = arith.constant 0 : index
    %1 = vector.load %arg2[%c0_1, %c0_2] : memref<16x64xf32, #tpu.memory_space<vmem>>, vector<16x64xf32>
    %c0_3 = arith.constant 0 : index
    %c0_4 = arith.constant 0 : index
    %c0_5 = arith.constant 0 : index
    %2 = vector.load %arg3[%c0_3, %c0_4, %c0_5] : memref<4x16x16xf32, #tpu.memory_space<vmem>>, vector<4x16x16xf32>
    %3 = vector.shape_cast %2 : vector<4x16x16xf32> to vector<64x16xf32>
    %cst = arith.constant dense<0.000000e+00> : vector<64x64xf32>
    %4 = tpu.matmul %3, %1, %cst {dimension_numbers = #tpu.dot_dimension_numbers<[1], [0], [0], [1], [0, 0, 1, 1], [], []>} : vector<64x16xf32>, vector<16x64xf32>, vector<64x64xf32> -> vector<64x64xf32>
    %5 = vector.shape_cast %4 : vector<64x64xf32> to vector<4x16x64xf32>
    %6 = vector.extract_strided_slice %5 {offsets = [0, 0, 0], sizes = [1, 16, 64], strides = [1, 1, 1]} : vector<4x16x64xf32> to vector<1x16x64xf32>
    %7 = vector.shape_cast %6 : vector<1x16x64xf32> to vector<16x64xf32>
    %cst_6 = arith.constant dense<0.000000e+00> : vector<64x64xf32>
    %8 = tpu.matmul %0, %7, %cst_6 {dimension_numbers = #tpu.dot_dimension_numbers<[1], [0], [0], [1], [0, 0, 1, 1], [], []>} : vector<64x16xf32>, vector<16x64xf32>, vector<64x64xf32> -> vector<64x64xf32>
    %c0_7 = arith.constant 0 : index
    %c0_8 = arith.constant 0 : index
    %c0_9 = arith.constant 0 : index
    %9 = vector.load %arg4[%c0_7, %c0_8, %c0_9] : memref<4x64x64xf32, #tpu.memory_space<vmem>>, vector<1x64x64xf32>
    %10 = vector.shape_cast %9 : vector<1x64x64xf32> to vector<64x64xf32>
    %11 = vector.shape_cast %8 : vector<64x64xf32> to vector<1x64x64xf32>
    tpu.vector_store %arg4[%c0_7, %c0_8, %c0_9], %11 {strides = array<i32>} : memref<4x64x64xf32, #tpu.memory_space<vmem>>, vector<1x64x64xf32>,
    %12 = vector.extract_strided_slice %5 {offsets = [1, 0, 0], sizes = [1, 16, 64], strides = [1, 1, 1]} : vector<4x16x64xf32> to vector<1x16x64xf32>
    %13 = vector.shape_cast %12 : vector<1x16x64xf32> to vector<16x64xf32>
    %cst_10 = arith.constant dense<0.000000e+00> : vector<64x64xf32>
    %14 = tpu.matmul %0, %13, %cst_10 {dimension_numbers = #tpu.dot_dimension_numbers<[1], [0], [0], [1], [0, 0, 1, 1], [], []>} : vector<64x16xf32>, vector<16x64xf32>, vector<64x64xf32> -> vector<64x64xf32>
    %c1 = arith.constant 1 : index
    %c0_11 = arith.constant 0 : index
    %c0_12 = arith.constant 0 : index
    %15 = vector.load %arg4[%c1, %c0_11, %c0_12] : memref<4x64x64xf32, #tpu.memory_space<vmem>>, vector<1x64x64xf32>
    %16 = vector.shape_cast %15 : vector<1x64x64xf32> to vector<64x64xf32>
    %17 = vector.shape_cast %14 : vector<64x64xf32> to vector<1x64x64xf32>
    tpu.vector_store %arg4[%c1, %c0_11, %c0_12], %17 {strides = array<i32>} : memref<4x64x64xf32, #tpu.memory_space<vmem>>, vector<1x64x64xf32>,
    %18 = vector.extract_strided_slice %5 {offsets = [2, 0, 0], sizes = [1, 16, 64], strides = [1, 1, 1]} : vector<4x16x64xf32> to vector<1x16x64xf32>
    %19 = vector.shape_cast %18 : vector<1x16x64xf32> to vector<16x64xf32>
    %cst_13 = arith.constant dense<0.000000e+00> : vector<64x64xf32>
    %20 = tpu.matmul %0, %19, %cst_13 {dimension_numbers = #tpu.dot_dimension_numbers<[1], [0], [0], [1], [0, 0, 1, 1], [], []>} : vector<64x16xf32>, vector<16x64xf32>, vector<64x64xf32> -> vector<64x64xf32>
    %c2 = arith.constant 2 : index
    %c0_14 = arith.constant 0 : index
    %c0_15 = arith.constant 0 : index
    %21 = vector.load %arg4[%c2, %c0_14, %c0_15] : memref<4x64x64xf32, #tpu.memory_space<vmem>>, vector<1x64x64xf32>
    %22 = vector.shape_cast %21 : vector<1x64x64xf32> to vector<64x64xf32>
    %23 = vector.shape_cast %20 : vector<64x64xf32> to vector<1x64x64xf32>
    tpu.vector_store %arg4[%c2, %c0_14, %c0_15], %23 {strides = array<i32>} : memref<4x64x64xf32, #tpu.memory_space<vmem>>, vector<1x64x64xf32>,
    %24 = vector.extract_strided_slice %5 {offsets = [3, 0, 0], sizes = [1, 16, 64], strides = [1, 1, 1]} : vector<4x16x64xf32> to vector<1x16x64xf32>
    %25 = vector.shape_cast %24 : vector<1x16x64xf32> to vector<16x64xf32>
    %cst_16 = arith.constant dense<0.000000e+00> : vector<64x64xf32>
    %26 = tpu.matmul %0, %25, %cst_16 {dimension_numbers = #tpu.dot_dimension_numbers<[1], [0], [0], [1], [0, 0, 1, 1], [], []>} : vector<64x16xf32>, vector<16x64xf32>, vector<64x64xf32> -> vector<64x64xf32>
    %c3 = arith.constant 3 : index
    %c0_17 = arith.constant 0 : index
    %c0_18 = arith.constant 0 : index
    %27 = vector.load %arg4[%c3, %c0_17, %c0_18] : memref<4x64x64xf32, #tpu.memory_space<vmem>>, vector<1x64x64xf32>
    %28 = vector.shape_cast %27 : vector<1x64x64xf32> to vector<64x64xf32>
    %29 = vector.shape_cast %26 : vector<64x64xf32> to vector<1x64x64xf32>
    tpu.vector_store %arg4[%c3, %c0_17, %c0_18], %29 {strides = array<i32>} : memref<4x64x64xf32, #tpu.memory_space<vmem>>, vector<1x64x64xf32>,
    return
  }
  func.func @transform_0(%arg0: i32) -> (i32, i32) {
    %c0_i32 = arith.constant 0 : i32
    %c0_i32_0 = arith.constant 0 : i32
    %c0_i32_1 = arith.constant 0 : i32
    return %c0_i32, %c0_i32_0 : i32, i32
  }
  func.func @transform_1(%arg0: i32) -> (i32, i32) {
    %c0_i32 = arith.constant 0 : i32
    %c0_i32_0 = arith.constant 0 : i32
    %c0_i32_1 = arith.constant 0 : i32
    return %c0_i32, %c0_i32_0 : i32, i32
  }
  func.func @transform_2(%arg0: i32) -> (i32, i32, i32) {
    %c0_i32 = arith.constant 0 : i32
    %c0_i32_0 = arith.constant 0 : i32
    %c0_i32_1 = arith.constant 0 : i32
    return %arg0, %c0_i32, %c0_i32_0 : i32, i32, i32
  }
  func.func @transform_3(%arg0: i32) -> (i32, i32, i32) {
    %c0_i32 = arith.constant 0 : i32
    %c0_i32_0 = arith.constant 0 : i32
    %c0_i32_1 = arith.constant 0 : i32
    return %arg0, %c0_i32, %c0_i32_0 : i32, i32, i32
  }
}

</mosaic_0001>

<bundles_post_ra>
// kernel: tpu_custom_call.1
= control target key start
LH: loop header
LB: loop body
LE: loop exit
PB: predicated region body
PF: predicated region fallthrough
CT: control target
= control target key end

     0   :  { %8 = vsyncpa [#allocation3], 0  ;;  %s1119_s0 = inlined_call_operand.vmem [shape: f32[64,16], index: 0, kind: input, shape index: {}]   ;;  %s1120_s1 = inlined_call_operand.vmem [shape: f32[16,64], index: 1, kind: input, shape index: {}]   ;;  %s1121_s2 = inlined_call_operand.hbm [shape: f32[8,16,16], index: 2, kind: input, shape index: {}]   ;;  %s1122_s3 = inlined_call_operand.hbm [shape: f32[8,64,64], index: 3, kind: output, shape index: {}]  }
   0x1   :  { %10 = vsyncpa [#allocation3 + $0x1], 0 }
   0x2   :  { %11 = vsyncpa [#allocation4], 0 }
   0x3   :  { %13 = vsyncpa [#allocation4 + $0x1], 0  ;;  %s854_s12 = smov 0   ;;  %s856_s13 = smov 0  }
   0x4   :  { %s858_s14 = smov 0   ;;  %s860_s15 = smov 0  }
   0x5 LB: > { %s875_s16 = sadd.s32 4294967295, %s828_s15   ;;  %s592_s17 = sadd.s32 4294967294, %s828_s15   ;;  %s828_s15 = sphi %s860_s15, %s1132_s15   ;;  %s824_s14 = sphi %s858_s14, %s1131_s14   ;;  %s820_s13 = sphi %s856_s13, %s1130_s13   ;;  %s816_s12 = sphi %s854_s12, %s1129_s12  }
   0x6   : > { %s879_s18 = sadd.s32 1, %s828_s15   ;;  %s68_s19 = sadd.s32 1, %s824_s14 }
   0x7   : > { %s65_s20 = ssub.s32 %s828_s15, %s879_s18  ;;  %p75_p0 = scmp.ne.s32.totalorder %s824_s14, %s820_s13 }
   0x8   : > { %p66_p1 = scmp.eq.s32.totalorder %s65_s20, 0  ;;  %p76_p2 = scmp.eq.s32.totalorder %s828_s15, 0 }
   0x9   : > { %p81_p3 = scmp.ne.s32.totalorder %s820_s13, %s816_s12  ;;  %p82_p4 = scmp.eq.s32.totalorder %s875_s16, 0 }
   0xa   : > { %s891_s21 = scalar_select %p66_p1, %s824_s14, %s68_s19  }
   0xb   : > { %p893_p5 = por %p76_p2, %p75_p0  ;;  %p897_p6 = por %p82_p4, %p81_p3 }
   0xc   : > { %p105_p7 = scmp.eq.s32.totalorder %s875_s16, 1  ;;  %p111_p8 = scmp.eq.s32.totalorder %s592_s17, 1 }
   0xd   : > { %p694_p10 = scmp.lt.s32.totalorder %s828_s15, 2  ;;  %s137_s26 = sand.u32 1, %s824_s14  }
   0xe   : > { %p904_p11 = por %p105_p7, %p75_p0  ;;  %p908_p12 = por %p111_p8, %p81_p3 }
   0xf   : > { %s673_s27 = sshll.u32 %s828_s15, 6  ;;  %s595_s28 = sshll.u32 %s137_s26, 6 }
  0x10   : > { %s147_s4 = scalar_lea.hbm %s1121_s2, %s673_s27  ;;  %s141_s6 = scalar_lea.vmem [#allocation2], %s595_s28 }
  0x11   : > { %s148_s5 = sshll.u32 %s147_s4, 4  ;;  %s150_s7 = sshll.u32 %s141_s6, 4  ;;  %s149_s5 = int_to_ptr.hbm [resolvable:$true] %s148_s5  ;;  %s151_s7 = int_to_ptr.vmem [resolvable:$true] %s150_s7 }
  0x12   : > { %p919_p13 = pnand %p694_p10, %p893_p5  ;;  %p599_p0 = scmp.ge.s32.totalorder %s828_s15, 1 }
  0x13   : > { %p158_p1 = scmp.lt.s32.totalorder %s828_s15, 3  ;;  %s138_s9 = scalar_lea.sflag [#allocation3], %s137_s26 }
  0x14   : > { %s732_s10 = sshra.s32 %s149_s5, 4  ;;  %p736_p3 = pneg %p919_p13  ;;  %s733_s10 = int_to_ptr.hbm [resolvable:$true] %s732_s10 }
  0x15   : > { %s734_s11 = scalar_lea.hbm %s733_s10, 64  ;;  %s739_s20 = scalar_lea.hbm %s1121_s2, 128 }
  0x16   : > { %p735_p2 = scmp.ne.s32.totalorder %s733_s10, %s734_s11  ;;  %p740_p5 = scmp.lt.s32.totalorder %s733_s10, %s1121_s2 }
  0x17   : > { %p741_p8 = scmp.lt.s32.totalorder %s739_s20, %s734_s11 }
  0x18   : > { %p737_p4 = pnand %p736_p3, %p735_p2 }
  0x19   : > { %p742_p10 = por %p741_p8, %p740_p5 }
  0x1a   : > { %p738_p7 = pneg %p737_p4 }
  0x1c   : > { %p743_p9 = pnand %p742_p10, %p738_p7 }
  0x1e   : > { %746 = shalt.err (!%p743_p9)
}
  0x1f   : > { %s830_s26 = smov 128   ;;  %s831_s28 = smov 8  }
  0x20   : > { %689 = dma.hbm_to_vmem [thread:$0]  (!%p919_p13), %s149_s5, 1024, %s151_s7, %s138_s9, %s830_s26, %s830_s26, %s831_s28  }
  0x21   : > { %p159_p2 = pnand %p599_p0, %p158_p1 }
  0x22   : > { %s940_s29 = sand.u32 (!%p159_p2), 1, %s820_s13  }
  0x23   : > { %162 = sbr.rel (%p159_p2) target bundleno = 381 (0x17d), region = 32  ;;  %s600_s30 = sshll.u32 (!%p159_p2), %s940_s29, 6 }
  0x24   : > { %s165_s4 = scalar_lea.sflag (!%p159_p2), [#allocation3], %s940_s29  ;;  %s168_s6 = scalar_lea.vmem (!%p159_p2), [#allocation2], %s600_s30 }
  0x28   : > { %807 = dma.done.wait (%p897_p6), %s165_s4, 1024  }
  0x29   : > { %809 = vsyncadd (%p897_p6), %s165_s4, 4294966272  ;;  %v203_v0 = vld [vmem:[%s1120_s1 + $0x8] sm:$0xff]  ;;  %v202_v1 = vld [vmem:[%s1120_s1] sm:$0xff]  ;;  %vm212_vm0 = vcmask 130048   ;;  %s601_s9 = sshll.u32 %s940_s29, 8  ;;  %vm343_vm1 = vcmask 523264  }
  0x2a   : > { %676 = vmatpush.msra.mxu1 %v203_v0  ;;  %677 = vmatpush.msra.mxu2 %v203_v0  ;;  %v206_v2 = vld [vmem:[%s168_s6 + $0x10] sm:$0xff]  ;;  %v208_v3 = vld [vmem:[%s168_s6 + $0x20] sm:$0xff]  ;;  %v207_v6 = vld [vmem:[%s168_s6 + $0x18] sm:$0xff]  ;;  %s1019_s23 = scalar_lea.vmem [#allocation5], %s601_s9  ;;  %s675_s10 = sshll.u32 %s875_s16, 8 }
  0x2b   : > { %678 = vmatpush.msra.mxu3 %v203_v0  ;;  %251 = vmatpush.msra.mxu0 %v203_v0  ;;  %v210_v4 = vld [vmem:[%s168_s6 + $0x30] sm:$0xff]  ;;  %v204_v5 = vld [vmem:[%s168_s6] sm:$0xff]  ;;  %v209_v7 = vld [vmem:[%s168_s6 + $0x28] sm:$0xff]  ;;  %s515_s19 = scalar_lea.hbm %s1122_s3, %s675_s10  ;;  %s516_s20 = sshll.u32 %s1019_s23, 4  ;;  %s517_s20 = int_to_ptr.vmem [resolvable:$true] %s516_s20 }
  0x2c   : > { %679 = vmatpush.msra.mxu1 %v202_v1  ;;  %680 = vmatpush.msra.mxu2 %v202_v1  ;;  %v211_v8 = vld [vmem:[%s168_s6 + $0x38] sm:$0xff]  ;;  %v205_v9 = vld [vmem:[%s168_s6 + $0x8] sm:$0xff]  ;;  %v194_v15 = vld [vmem:[%s1119_s0] sm:$0xff]  ;;  %s518_s16 = sshll.u32 %s515_s19, 4  ;;  %s503_s22 = scalar_lea.sflag [#allocation4], %s940_s29  ;;  %s519_s16 = int_to_ptr.hbm [resolvable:$true] %s518_s16 }
  0x2d   : > { %681 = vmatpush.msra.mxu3 %v202_v1  ;;  %604 = vmatmul.msk.f32.vlgmr.msra.gmra.mxu1 %vm212_vm0, %v206_v2  ;;  %v195_v19 = vld [vmem:[%s1119_s0 + $0x8] sm:$0xff]  ;;  %v196_v20 = vld [vmem:[%s1119_s0 + $0x10] sm:$0xff]  ;;  %v197_v21 = vld [vmem:[%s1119_s0 + $0x18] sm:$0xff]  ;;  %s776_s27 = sshra.s32 %s519_s16, 4  ;;  %s782_s4 = scalar_lea.hbm %s1122_s3, 512  ;;  %s777_s27 = int_to_ptr.hbm [resolvable:$true] %s776_s27 }
  0x2e   : > { %606 = vmatmul.msk.f32.vlgmr.msra.gmra.mxu2 %vm212_vm0, %v208_v3  ;;  %608 = vmatmul.msk.f32.vlgmr.msra.gmra.mxu3 %vm212_vm0, %v210_v4  ;;  %v198_v22 = vld [vmem:[%s1119_s0 + $0x20] sm:$0xff]  ;;  %v199_v23 = vld [vmem:[%s1119_s0 + $0x28] sm:$0xff]  ;;  %v200_v24 = vld [vmem:[%s1119_s0 + $0x30] sm:$0xff]  ;;  %s778_s26 = scalar_lea.hbm %s777_s27, 256  ;;  %p783_p0 = scmp.lt.s32.totalorder %s777_s27, %s1122_s3 }
  0x2f   : > { %252 = vmatpush.msra.mxu0 %v202_v1  ;;  %v201_v25 = vld [vmem:[%s1119_s0 + $0x38] sm:$0xff]  ;;  %p779_p6 = scmp.ne.s32.totalorder %s777_s27, %s778_s26  ;;  %p784_p1 = scmp.lt.s32.totalorder %s782_s4, %s778_s26 }
  0x30   : > { %602 = vmatmul.msk.f32.vlgmr.msra.gmra.mxu0 %vm212_vm0, %v204_v5 }
  0x31   : > { %p780_p9 = pnand %p779_p6, %p904_p11  ;;  %p785_p3 = por %p784_p1, %p783_p0 }
  0x33   : > { %p781_p13 = pneg %p780_p9 }
  0x35   : > { %605 = vmatmul.msk.f32.gmra.mxu1 %vm212_vm0, %v207_v6  ;;  %p786_p4 = pnand %p785_p3, %p781_p13 }
  0x36   : > { %607 = vmatmul.msk.f32.gmra.mxu2 %vm212_vm0, %v209_v7  ;;  %609 = vmatmul.msk.f32.gmra.mxu3 %vm212_vm0, %v211_v8 }
  0x38   : > { %603 = vmatmul.msk.f32.gmra.mxu0 %vm212_vm0, %v205_v9 }
  0xaa   : > { %v260_v10 = vpop.f32.mrf.mxu1 }
  0xad   : > { %v254_v11 = vpop.f32.mrf.mxu0 }
  0xb1   : > { %v266_v12 = vpop.f32.mrf.mxu2  ;;  %v272_v13 = vpop.f32.mrf.mxu3 }
  0xb2   : > { %v263_v14 = vpop.f32.mrf.mxu1 }
  0xb3   : > { %366 = vmatpush.msrb.mxu2 %v263_v14 }
  0xb5   : > { %v257_v16 = vpop.f32.mrf.mxu0  ;;  %367 = vmatpush.msrb.mxu2 %v260_v10 }
  0xb6   : > { %316 = vmatpush.msrb.mxu1 %v257_v16  ;;  %618 = vmatmul.msk.f32.vlgmr.msrb.gmra.mxu2 %vm212_vm0, %v194_v15 }
  0xb8   : > { %317 = vmatpush.msrb.mxu1 %v254_v11 }
  0xb9   : > { %v269_v17 = vpop.f32.mrf.mxu2  ;;  %v275_v18 = vpop.f32.mrf.mxu3  ;;  %610 = vmatmul.msk.f32.vlgmr.msrb.gmra.mxu1 %vm212_vm0, %v194_v15 }
  0xba   : > { %416 = vmatpush.msrb.mxu3 %v269_v17  ;;  %466 = vmatpush.msrb.mxu0 %v275_v18 }
  0xbc   : > { %417 = vmatpush.msrb.mxu3 %v266_v12  ;;  %467 = vmatpush.msrb.mxu0 %v272_v13 }
  0xbd   : > { %634 = vmatmul.msk.f32.vlgmr.msrb.gmra.mxu3 %vm212_vm0, %v194_v15  ;;  %650 = vmatmul.msk.f32.vlgmr.msrb.gmra.mxu0 %vm212_vm0, %v194_v15 }
  0xbe   : > { %619 = vmatmul.msk.f32.gmra.mxu2 %vm212_vm0, %v195_v19 }
  0xc1   : > { %611 = vmatmul.msk.f32.gmra.mxu1 %vm212_vm0, %v195_v19 }
  0xc5   : > { %635 = vmatmul.msk.f32.gmra.mxu3 %vm212_vm0, %v195_v19  ;;  %651 = vmatmul.msk.f32.gmra.mxu0 %vm212_vm0, %v195_v19 }
  0xc6   : > { %620 = vmatmul.msk.f32.gmra.mxu2 %vm212_vm0, %v196_v20 }
  0xc9   : > { %612 = vmatmul.msk.f32.gmra.mxu1 %vm212_vm0, %v196_v20 }
  0xcd   : > { %636 = vmatmul.msk.f32.gmra.mxu3 %vm212_vm0, %v196_v20  ;;  %652 = vmatmul.msk.f32.gmra.mxu0 %vm212_vm0, %v196_v20 }
  0xce   : > { %621 = vmatmul.msk.f32.gmra.mxu2 %vm212_vm0, %v197_v21 }
  0xd1   : > { %613 = vmatmul.msk.f32.gmra.mxu1 %vm212_vm0, %v197_v21 }
  0xd5   : > { %637 = vmatmul.msk.f32.gmra.mxu3 %vm212_vm0, %v197_v21  ;;  %653 = vmatmul.msk.f32.gmra.mxu0 %vm212_vm0, %v197_v21 }
  0xd6   : > { %622 = vmatmul.msk.f32.gmra.mxu2 %vm212_vm0, %v198_v22 }
  0xd9   : > { %614 = vmatmul.msk.f32.gmra.mxu1 %vm212_vm0, %v198_v22 }
  0xdd   : > { %638 = vmatmul.msk.f32.gmra.mxu3 %vm212_vm0, %v198_v22  ;;  %654 = vmatmul.msk.f32.gmra.mxu0 %vm212_vm0, %v198_v22 }
  0xde   : > { %623 = vmatmul.msk.f32.gmra.mxu2 %vm212_vm0, %v199_v23 }
  0xe1   : > { %615 = vmatmul.msk.f32.gmra.mxu1 %vm212_vm0, %v199_v23 }
  0xe5   : > { %639 = vmatmul.msk.f32.gmra.mxu3 %vm212_vm0, %v199_v23  ;;  %655 = vmatmul.msk.f32.gmra.mxu0 %vm212_vm0, %v199_v23 }
  0xe6   : > { %624 = vmatmul.msk.f32.gmra.mxu2 %vm212_vm0, %v200_v24 }
  0xe9   : > { %616 = vmatmul.msk.f32.gmra.mxu1 %vm212_vm0, %v200_v24 }
  0xed   : > { %640 = vmatmul.msk.f32.gmra.mxu3 %vm212_vm0, %v200_v24  ;;  %656 = vmatmul.msk.f32.gmra.mxu0 %vm212_vm0, %v200_v24 }
  0xee   : > { %625 = vmatmul.msk.f32.gmra.mxu2 %vm212_vm0, %v201_v25 }
  0xf1   : > { %617 = vmatmul.msk.f32.gmra.mxu1 %vm212_vm0, %v201_v25 }
  0xf5   : > { %641 = vmatmul.msk.f32.gmra.mxu3 %vm212_vm0, %v201_v25  ;;  %657 = vmatmul.msk.f32.gmra.mxu0 %vm212_vm0, %v201_v25 }
 0x136   : > { %v319_v26 = vpop.f32.mrf.mxu1 }
 0x137   : > { %344 = vst.msk [vmem:[%s1019_s23] sm:$0xff] %vm343_vm1, %v319_v26 }
 0x139   : > { %v369_v27 = vpop.f32.mrf.mxu2 }
 0x13a   : > { %626 = vst.msk [vmem:[%s1019_s23 + $0x40] sm:$0xff] %vm343_vm1, %v369_v27  ;;  %v469_v28 = vpop.f32.mrf.mxu0 }
 0x13b   : > { %658 = vst.msk [vmem:[%s1019_s23 + $0xc0] sm:$0xff] %vm343_vm1, %v469_v28 }
 0x13e   : > { %v322_v29 = vpop.f32.mrf.mxu1 }
 0x13f   : > { %345 = vst.msk [vmem:[%s1019_s23 + $0x8] sm:$0xff] %vm343_vm1, %v322_v29 }
 0x140   : > { %v419_v30 = vpop.f32.mrf.mxu3 }
 0x141   : > { %642 = vst.msk [vmem:[%s1019_s23 + $0x80] sm:$0xff] %vm343_vm1, %v419_v30  ;;  %v372_v31 = vpop.f32.mrf.mxu2 }
 0x142   : > { %627 = vst.msk [vmem:[%s1019_s23 + $0x48] sm:$0xff] %vm343_vm1, %v372_v31  ;;  %v472_v32 = vpop.f32.mrf.mxu0 }
 0x143   : > { %659 = vst.msk [vmem:[%s1019_s23 + $0xc8] sm:$0xff] %vm343_vm1, %v472_v32 }
 0x146   : > { %v325_v33 = vpop.f32.mrf.mxu1 }
 0x147   : > { %346 = vst.msk [vmem:[%s1019_s23 + $0x10] sm:$0xff] %vm343_vm1, %v325_v33 }
 0x148   : > { %v422_v34 = vpop.f32.mrf.mxu3 }
 0x149   : > { %643 = vst.msk [vmem:[%s1019_s23 + $0x88] sm:$0xff] %vm343_vm1, %v422_v34  ;;  %v375_v35 = vpop.f32.mrf.mxu2 }
 0x14a   : > { %628 = vst.msk [vmem:[%s1019_s23 + $0x50] sm:$0xff] %vm343_vm1, %v375_v35  ;;  %v475_v36 = vpop.f32.mrf.mxu0 }
 0x14b   : > { %660 = vst.msk [vmem:[%s1019_s23 + $0xd0] sm:$0xff] %vm343_vm1, %v475_v36 }
 0x14e   : > { %v328_v37 = vpop.f32.mrf.mxu1 }
 0x14f   : > { %347 = vst.msk [vmem:[%s1019_s23 + $0x18] sm:$0xff] %vm343_vm1, %v328_v37 }
 0x150   : > { %v425_v38 = vpop.f32.mrf.mxu3 }
 0x151   : > { %644 = vst.msk [vmem:[%s1019_s23 + $0x90] sm:$0xff] %vm343_vm1, %v425_v38  ;;  %v378_v39 = vpop.f32.mrf.mxu2 }
 0x152   : > { %629 = vst.msk [vmem:[%s1019_s23 + $0x58] sm:$0xff] %vm343_vm1, %v378_v39  ;;  %v478_v40 = vpop.f32.mrf.mxu0 }
 0x153   : > { %661 = vst.msk [vmem:[%s1019_s23 + $0xd8] sm:$0xff] %vm343_vm1, %v478_v40 }
 0x156   : > { %v331_v41 = vpop.f32.mrf.mxu1 }
 0x157   : > { %348 = vst.msk [vmem:[%s1019_s23 + $0x20] sm:$0xff] %vm343_vm1, %v331_v41 }
 0x158   : > { %v428_v42 = vpop.f32.mrf.mxu3 }
 0x159   : > { %645 = vst.msk [vmem:[%s1019_s23 + $0x98] sm:$0xff] %vm343_vm1, %v428_v42  ;;  %v381_v43 = vpop.f32.mrf.mxu2 }
 0x15a   : > { %630 = vst.msk [vmem:[%s1019_s23 + $0x60] sm:$0xff] %vm343_vm1, %v381_v43  ;;  %v481_v44 = vpop.f32.mrf.mxu0 }
 0x15b   : > { %662 = vst.msk [vmem:[%s1019_s23 + $0xe0] sm:$0xff] %vm343_vm1, %v481_v44 }
 0x15e   : > { %v334_v45 = vpop.f32.mrf.mxu1 }
 0x15f   : > { %349 = vst.msk [vmem:[%s1019_s23 + $0x28] sm:$0xff] %vm343_vm1, %v334_v45 }
 0x160   : > { %v431_v46 = vpop.f32.mrf.mxu3 }
 0x161   : > { %646 = vst.msk [vmem:[%s1019_s23 + $0xa0] sm:$0xff] %vm343_vm1, %v431_v46  ;;  %v384_v47 = vpop.f32.mrf.mxu2 }
 0x162   : > { %631 = vst.msk [vmem:[%s1019_s23 + $0x68] sm:$0xff] %vm343_vm1, %v384_v47  ;;  %v484_v48 = vpop.f32.mrf.mxu0 }
 0x163   : > { %663 = vst.msk [vmem:[%s1019_s23 + $0xe8] sm:$0xff] %vm343_vm1, %v484_v48 }
 0x166   : > { %v337_v49 = vpop.f32.mrf.mxu1 }
 0x167   : > { %350 = vst.msk [vmem:[%s1019_s23 + $0x30] sm:$0xff] %vm343_vm1, %v337_v49 }
 0x168   : > { %v434_v50 = vpop.f32.mrf.mxu3 }
 0x169   : > { %647 = vst.msk [vmem:[%s1019_s23 + $0xa8] sm:$0xff] %vm343_vm1, %v434_v50  ;;  %v387_v51 = vpop.f32.mrf.mxu2 }
 0x16a   : > { %632 = vst.msk [vmem:[%s1019_s23 + $0x70] sm:$0xff] %vm343_vm1, %v387_v51  ;;  %v487_v52 = vpop.f32.mrf.mxu0 }
 0x16b   : > { %664 = vst.msk [vmem:[%s1019_s23 + $0xf0] sm:$0xff] %vm343_vm1, %v487_v52 }
 0x16e   : > { %v340_v53 = vpop.f32.mrf.mxu1 }
 0x16f   : > { %351 = vst.msk [vmem:[%s1019_s23 + $0x38] sm:$0xff] %vm343_vm1, %v340_v53 }
 0x170   : > { %v437_v54 = vpop.f32.mrf.mxu3 }
 0x171   : > { %648 = vst.msk [vmem:[%s1019_s23 + $0xb0] sm:$0xff] %vm343_vm1, %v437_v54  ;;  %v390_v55 = vpop.f32.mrf.mxu2 }
 0x172   : > { %633 = vst.msk [vmem:[%s1019_s23 + $0x78] sm:$0xff] %vm343_vm1, %v390_v55  ;;  %v490_v56 = vpop.f32.mrf.mxu0 }
 0x173   : > { %665 = vst.msk [vmem:[%s1019_s23 + $0xf8] sm:$0xff] %vm343_vm1, %v490_v56 }
 0x178   : > { %v440_v57 = vpop.f32.mrf.mxu3 }
 0x179   : > { %649 = vst.msk [vmem:[%s1019_s23 + $0xb8] sm:$0xff] %vm343_vm1, %v440_v57 }
 0x17a   : > { %789 = shalt.err (!%p786_p4)
}
 0x17b   : > { %s832_s29 = smov 128   ;;  %s833_s5 = smov 8  }
 0x17c   : > { %684 = dma.vmem_to_hbm [thread:$0]  (%p904_p11), %s517_s20, 4096, %s519_s16, %s503_s22, %s832_s29, %s832_s29, %s833_s5  }
 0x17d PF: > { %s533_s7 = sand.u32 1, %s816_s12   ;;  %p1128_p7 = scmp.ge.s32.totalorder %s828_s15, 2 }
 0x17e   : > { %s534_s9 = scalar_lea.sflag [#allocation4], %s533_s7 }
 0x17f   : > { %p691_p5 = pnand %p1128_p7, %p908_p12 }
 0x181   : > { %p692_p8 = pneg %p691_p5 }
 0x183   : > { %811 = dma.done.wait (%p692_p8), %s534_s9, 4096  }
 0x184   : > { %813 = vsyncadd (%p692_p8), %s534_s9, 4294963200  ;;  %p16_p10 = scmp.ge.s32.totalorder %s879_s18, 4   ;;  %s1129_s12 = smov %s820_s13 }
 0x185   : > { %s1130_s13 = smov %s824_s14  ;;  %s1131_s14 = smov %s891_s21 }
 0x186   : > { %s1132_s15 = smov %s879_s18  ;;  %18 = sbr.rel (!%p16_p10) target bundleno = 5 (0x5), region = 80 }
 0x18b   :  { %540 = vsyncpa [#allocation3], 1 }
 0x18c   :  { %542 = vsyncpa [#allocation3 + $0x1], 1 }
 0x18d   :  { %543 = vsyncpa [#allocation4], 1 }
 0x18e   :  { %545 = vsyncpa [#allocation4 + $0x1], 1 }

</bundles_post_ra>
